<compile_context>
chip_gen: v6e
topology: v6e:2x2x1
jax: 0.10.0
libtpu: 0.0.40
codegen_flags: <defaults>
</compile_context>

<pallas_src>
import numpy as np
import jax
import jax.numpy as jnp
from jax import lax
from jax.experimental import pallas as pl
from jax.experimental.pallas import tpu as pltpu


def _round_up(x, m):
    return ((x + m - 1) // m) * m


def _tap_offsets():
    """Unique (dh, dw) offsets into the pad-2 buffer covering both the
    dilation-1 (padding=1) and dilation-2 (padding=2) 3x3 taps."""
    offsets = []
    d1, d2 = {}, {}
    for kh in range(3):
        for kw in range(3):
            off = (kh + 1, kw + 1)            # dilation-1 branch
            if off not in offsets:
                offsets.append(off)
            d1[(kh, kw)] = offsets.index(off)
    for kh in range(3):
        for kw in range(3):
            off = (2 * kh, 2 * kw)            # dilation-2 branch
            if off not in offsets:
                offsets.append(off)
            d2[(kh, kw)] = offsets.index(off)
    return offsets, d1, d2


def _choose_row_block(H, Wp, Cin_p, Cout_p, N, vmem_cap):
    """Rows per grid step: fit a modest VMEM budget (v7x: 64 MiB physical) and
    give the grid >= ~4 steps so both v7x TensorCores and the DMA pipeline
    have work."""
    per_row = Wp * (2 * Cin_p * 2       # double-buffered input block (bf16)
                    + 2 * Cout_p * 2    # double-buffered pre block (bf16)
                    + Cout_p * 4        # f32 accumulator
                    + 2 * Cin_p * 2)    # tap-slice temporaries
    budget = max(8, min(16, vmem_cap // (5 * 1024 * 1024))) * 1024 * 1024
    R = max(1, min(H, budget // max(per_row, 1)))
    min_blocks = max(1, -(-4 // max(N, 1)))     # want >= 4 grid steps total
    if H >= 8 * min_blocks:
        R = min(R, -(-H // min_blocks))
    nblk = -(-H // R)
    R = -(-H // nblk)                            # rebalance block sizes
    nblk = -(-H // R)
    return R, nblk


def _make_pass1_kernel(Wp, RWp, Cin_p, T, offsets, use_packed):
    """Fused (conv0 ∘ {conv1,conv2} [+residual]) + masked partial BN stats.

    Refs per grid step (one image, one row block):
      xf_ref   : (1, 1, Cin_p, (R+5)*Wp) bf16  padded input rows, flat lanes
      w_ref    : (Cout_p, T*Cin_p)       bf16  folded per-tap weights
      mask_ref : (1, 1, R*Wp)            f32   1.0 on valid (row<H, col<W) lanes
      pre_ref  : (1, 1, Cout_p, R*Wp)    bf16  masked pre-BN activations
      stats_ref: (1, 1, Cout_p, 2)       f32   per-channel [sum, sum-of-squares]
    """
    def kernel(xf_ref, w_ref, mask_ref, pre_ref, stats_ref):
        def xpiece(t):
            dh, dw = offsets[t]
            off = dh * Wp + dw                     # pure lane slice, no reshape
            return xf_ref[0, 0, :, off:off + RWp]  # (Cin_p, R*Wp) bf16

        if use_packed:
            # very small Cin: single matmul with all taps packed into K.
            slab = jnp.concatenate([xpiece(t) for t in range(T)], axis=0)
            acc = jnp.dot(w_ref[...], slab, preferred_element_type=jnp.float32)
        else:
            # realistic Cin: one accumulating MXU dot per tap (no im2col slab).
            acc = jnp.dot(w_ref[:, 0:Cin_p], xpiece(0),
                          preferred_element_type=jnp.float32)
            for t in range(1, T):
                acc = acc + jnp.dot(w_ref[:, t * Cin_p:(t + 1) * Cin_p],
                                    xpiece(t),
                                    preferred_element_type=jnp.float32)

        # Mask once (zeroes the padded-width / padded-height garbage lanes) and
        # reuse the masked value for both the bf16 store and the f32 stats.
        pre = acc * mask_ref[0]                               # (Cout_p, R*Wp)
        pre_ref[0, 0] = pre.astype(pre_ref.dtype)
        stats_ref[0, 0, :, 0:1] = jnp.sum(pre, axis=1, keepdims=True)
        stats_ref[0, 0, :, 1:2] = jnp.sum(pre * pre, axis=1, keepdims=True)

    return kernel


def dilated_parallel_conv_block_d2(x_nchw, w0, w1, w2, gamma, beta,
                                   *, add=False, eps=1e-5):
    """Forward of DilatedParallelConvBlockD2 (training-mode BatchNorm).

    x_nchw: (N, Cin, H, W); w0: (Cout, Cin, 1, 1); w1: (n1, n1, 3, 3);
    w2: (n2, n2, 3, 3); gamma/beta: (Cout,).  Returns (N, Cout, H, W) f32.
    """
    N, Cin, H, W = map(int, x_nchw.shape)
    Cout = int(w0.shape[0])
    n1, n2 = int(w1.shape[0]), int(w2.shape[0])
    assert n1 == int(np.ceil(Cout / 2.0)) and n1 + n2 == Cout
    if add:
        assert Cin == Cout, "residual add requires nIn == nOut"

    offsets, d1, d2 = _tap_offsets()
    T = len(offsets)                       # 17 unique taps
    Cin_p = _round_up(Cin, 16)             # bf16 sublane pack alignment
    Cout_p = _round_up(Cout, 8)
    Wp = W + 4                             # pad 2 left / 2 right

    # ---- per-generation VMEM budget & halo'd row-block tiling ---------------
    try:
        vmem_cap = int(pltpu.get_tpu_info().vmem_capacity_bytes)
    except Exception:
        vmem_cap = 64 * 1024 * 1024        # assume v7x (smallest) if unknown
    R, nblk = _choose_row_block(H, Wp, Cin_p, Cout_p, N, vmem_cap)
    H_t = nblk * R
    RWp, R5Wp = R * Wp, (R + 5) * Wp       # 4-row halo + 1 spill row per block
    use_packed = Cin_p < 32                # packed im2col only for tiny Cin
    # TODO(synk): for very small channel counts also batch several images per
    # grid step to amortize the ~0.35us per-step overhead and the MXU weight push.

    # ---- fold conv0 (and optional residual) into one per-tap weight matrix --
    w0m = w0[:, :, 0, 0].astype(jnp.float32)               # (Cout, Cin)
    w0a, w0b = w0m[:n1], w0m[n1:]
    w_eff = jnp.zeros((Cout, T, Cin), jnp.float32)
    for kh in range(3):
        for kw in range(3):
            w_eff = w_eff.at[:n1, d1[(kh, kw)], :].add(
                w1[:, :, kh, kw].astype(jnp.float32) @ w0a)
            w_eff = w_eff.at[n1:, d2[(kh, kw)], :].add(
                w2[:, :, kh, kw].astype(jnp.float32) @ w0b)
    if add:
        w_eff = w_eff.at[:, offsets.index((2, 2)), :].add(
            jnp.eye(Cout, Cin, dtype=jnp.float32))
    w_eff = jnp.pad(w_eff, ((0, Cout_p - Cout), (0, 0), (0, Cin_p - Cin)))
    w_packed = w_eff.reshape(Cout_p, T * Cin_p).astype(jnp.bfloat16)

    # ---- bf16 BEFORE padding; pad channels + rows/cols; build row blocks ----
    Hp_t = H_t + 5                         # 2 top + bottom pad + 1 spill row
    xpad = jnp.pad(x_nchw.astype(jnp.bfloat16),
                   ((0, 0), (0, Cin_p - Cin), (2, Hp_t - H - 2), (2, 2)))
    xb = jnp.concatenate(
        [xpad[:, None, :, j * R:j * R + R + 5, :] for j in range(nblk)], axis=1)
    xb = xb.reshape(N, nblk, Cin_p, R5Wp)  # (N, nblk, Cin_p, (R+5)*Wp)

    # lane-validity mask per row block (1.0 iff global row < H and col < W)
    rows = np.arange(H_t, dtype=np.int32).reshape(nblk, R, 1)
    cols = np.arange(Wp, dtype=np.int32).reshape(1, 1, Wp)
    mask = jnp.asarray(((rows < H) & (cols < W))
                       .astype(np.float32).reshape(nblk, 1, RWp))

    # ---- explicit scoped-VMEM limit sized to the per-step working set -------
    TK = T * Cin_p
    work = (2 * Cin_p * R5Wp * 2 + 2 * Cout_p * RWp * 2 + Cout_p * RWp * 4
            + 2 * Cout_p * TK * 2 + 2 * Cin_p * RWp * 2
            + (TK * RWp * 2 if use_packed else 0)
            + 2 * RWp * 4 + 4 * Cout_p * 4)
    vmem_limit = int(min(max(2 * work, 32 * 1024 * 1024),
                         int(0.85 * vmem_cap)))

    # ---- pass 1: fused conv(+residual) + masked partial BN statistics -------
    pre, stats = pl.pallas_call(
        _make_pass1_kernel(Wp, RWp, Cin_p, T, offsets, use_packed),
        out_shape=(jax.ShapeDtypeStruct((N, nblk, Cout_p, RWp), jnp.bfloat16),
                   jax.ShapeDtypeStruct((N, nblk, Cout_p, 2), jnp.float32)),
        grid=(N, nblk),
        in_specs=[pl.BlockSpec((1, 1, Cin_p, R5Wp), lambda n, j: (n, j, 0, 0)),
                  pl.BlockSpec((Cout_p, T * Cin_p), lambda n, j: (0, 0)),
                  pl.BlockSpec((1, 1, RWp), lambda n, j: (j, 0, 0))],
        out_specs=(pl.BlockSpec((1, 1, Cout_p, RWp), lambda n, j: (n, j, 0, 0)),
                   pl.BlockSpec((1, 1, Cout_p, 2), lambda n, j: (n, j, 0, 0))),
        compiler_params=pltpu.CompilerParams(
            dimension_semantics=("parallel", "parallel"),
            vmem_limit_bytes=vmem_limit),
    )(xb, w_packed, mask)

    # ---- finalize BatchNorm batch statistics (biased variance, f32) ---------
    st = stats.sum(axis=(0, 1))                              # (Cout_p, 2)
    cnt = float(N * H * W)
    mean = st[:, 0] / cnt
    var = jnp.maximum(st[:, 1] / cnt - mean * mean, 0.0)
    # TODO(synk): E[x^2]-E[x]^2 in f32 can cancel for large-mean activations;
    # switch to per-tile centered sums (Welford merge) if this feeds training.
    g = jnp.pad(gamma.astype(jnp.float32), (0, Cout_p - Cout))
    b = jnp.pad(beta.astype(jnp.float32), (0, Cout_p - Cout))
    scale = g * lax.rsqrt(var + eps)
    shift = b - mean * scale

    # ---- pass 2: BN affine + layout restore + crop, fused by XLA ------------
    # (for W < 128 a Pallas pass-2 output block would be lane-sparse; letting
    #  XLA fuse the affine with the reshape/slice avoids an extra HBM pass)
    pre = pre.reshape(N, nblk, Cout_p, R, Wp)
    pre = jnp.moveaxis(pre, 2, 1).reshape(N, Cout_p, H_t, Wp)
    pre = pre[:, :Cout, :H, :W].astype(jnp.float32)
    return (pre * scale[:Cout].reshape(1, Cout, 1, 1)
            + shift[:Cout].reshape(1, Cout, 1, 1))


def _reference(x, w0, w1, w2, gamma, beta, add, eps):
    """Pure-JAX NCHW reference mirroring the PyTorch forward (training-mode BN)."""
    dn = ("NCHW", "OIHW", "NCHW")
    in0 = lax.conv_general_dilated(x, w0, (1, 1), "VALID", dimension_numbers=dn)
    n1 = w1.shape[0]
    in1, in2 = in0[:, :n1], in0[:, n1:]
    b1 = lax.conv_general_dilated(in1, w1, (1, 1), ((1, 1), (1, 1)),
                                  dimension_numbers=dn)
    b2 = lax.conv_general_dilated(in2, w2, (1, 1), ((2, 2), (2, 2)),
                                  rhs_dilation=(2, 2), dimension_numbers=dn)
    out = jnp.concatenate([b1, b2], axis=1)
    if add:
        out = x + out
    mean = out.mean(axis=(0, 2, 3), keepdims=True)
    var = ((out - mean) ** 2).mean(axis=(0, 2, 3), keepdims=True)
    return ((out - mean) * lax.rsqrt(var + eps) * gamma.reshape(1, -1, 1, 1)
            + beta.reshape(1, -1, 1, 1))


if __name__ == "__main__":
    eps = 1e-5
    key = jax.random.PRNGKey(0)

    def check(x, w0, w1, w2, gamma, beta, add, tol):
        fn = jax.jit(lambda *a: dilated_parallel_conv_block_d2(
            *a, add=add, eps=eps))
        out = jax.block_until_ready(fn(x, w0, w1, w2, gamma, beta))
        ref = _reference(x, w0, w1, w2, gamma, beta, add, eps)
        np.testing.assert_allclose(np.asarray(out), np.asarray(ref),
                                   atol=tol, rtol=tol)

    # case 1: add=False, nIn != nOut (small-Cin packed-K path, 2 row blocks)
    N, Cin, H, W, Cout = 2, 4, 16, 16, 8
    n1 = int(np.ceil(Cout / 2.0))
    n2 = Cout - n1
    ks = jax.random.split(key, 6)
    x = jax.random.normal(ks[0], (N, Cin, H, W), jnp.float32)
    w0 = jax.random.normal(ks[1], (Cout, Cin, 1, 1), jnp.float32) * 0.2
    w1 = jax.random.normal(ks[2], (n1, n1, 3, 3), jnp.float32) * 0.2
    w2 = jax.random.normal(ks[3], (n2, n2, 3, 3), jnp.float32) * 0.2
    gamma = 1.0 + 0.1 * jax.random.normal(ks[4], (Cout,), jnp.float32)
    beta = 0.1 * jax.random.normal(ks[5], (Cout,), jnp.float32)
    check(x, w0, w1, w2, gamma, beta, False, 3e-2)

    # case 2: add=True (nIn == nOut; residual folded into the centre tap)
    x2 = jax.random.normal(jax.random.PRNGKey(1), (N, Cout, H, W), jnp.float32)
    w0b = jax.random.normal(jax.random.PRNGKey(2), (Cout, Cout, 1, 1),
                            jnp.float32) * 0.2
    check(x2, w0b, w1, w2, gamma, beta, True, 3e-2)

    # case 3: wider channels -> per-tap accumulating-dot path (no im2col slab)
    Cin3 = Cout3 = 32
    n13 = int(np.ceil(Cout3 / 2.0))
    n23 = Cout3 - n13
    ks3 = jax.random.split(jax.random.PRNGKey(3), 6)
    x3 = jax.random.normal(ks3[0], (N, Cin3, H, W), jnp.float32)
    w03 = jax.random.normal(ks3[1], (Cout3, Cin3, 1, 1), jnp.float32) * 0.2
    w13 = jax.random.normal(ks3[2], (n13, n13, 3, 3), jnp.float32) * 0.2
    w23 = jax.random.normal(ks3[3], (n23, n23, 3, 3), jnp.float32) * 0.2
    g3 = 1.0 + 0.1 * jax.random.normal(ks3[4], (Cout3,), jnp.float32)
    b3 = 0.1 * jax.random.normal(ks3[5], (Cout3,), jnp.float32)
    check(x3, w03, w13, w23, g3, b3, False, 3e-2)

    # TODO(synk): BatchNorm running_mean/running_var momentum updates are not
    # modeled (training-state side effect; does not affect the forward output).
    print("KERNEL_OK")
</pallas_src>

<mosaic_0001>
module attributes {stable_mosaic.version = 11 : i64} {
  func.func @kernel(%arg0: i32, %arg1: i32, %arg2: memref<1x1x16x260xbf16, #tpu.memory_space<vmem>>, %arg3: memref<8x272xbf16, #tpu.memory_space<vmem>>, %arg4: memref<1x1x160xf32, #tpu.memory_space<vmem>>, %arg5: memref<1x1x8x160xbf16, #tpu.memory_space<vmem>>, %arg6: memref<1x1x8x2xf32, #tpu.memory_space<vmem>>) attributes {dimension_semantics = [#tpu.dimension_semantics<parallel>, #tpu.dimension_semantics<parallel>], iteration_bounds = array<i64: 2, 2>, scalar_prefetch = 0 : i64, scratch_operands = 0 : i64, tpu.core_type = #tpu.core_type<tc>, window_params = [{transform_indices = @transform_0, window_bounds = array<i64: 1, 1, 16, 260>}, {pipeline_mode = #tpu.pipeline_mode<synchronous>, transform_indices = @transform_1, window_bounds = array<i64: 8, 272>}, {transform_indices = @transform_2, window_bounds = array<i64: 1, 1, 160>}, {transform_indices = @transform_3, window_bounds = array<i64: 1, 1, 8, 160>}, {transform_indices = @transform_4, window_bounds = array<i64: 1, 1, 8, 2>}]} {
    %c0 = arith.constant 0 : index
    %c0_0 = arith.constant 0 : index
    %c0_1 = arith.constant 0 : index
    %c21 = arith.constant 21 : index
    %0 = vector.load %arg2[%c0, %c0_0, %c0_1, %c21] : memref<1x1x16x260xbf16, #tpu.memory_space<vmem>>, vector<1x1x16x160xbf16>
    %1 = vector.shape_cast %0 : vector<1x1x16x160xbf16> to vector<16x160xbf16>
    %c0_2 = arith.constant 0 : index
    %c0_3 = arith.constant 0 : index
    %c0_4 = arith.constant 0 : index
    %c22 = arith.constant 22 : index
    %2 = vector.load %arg2[%c0_2, %c0_3, %c0_4, %c22] : memref<1x1x16x260xbf16, #tpu.memory_space<vmem>>, vector<1x1x16x160xbf16>
    %3 = vector.shape_cast %2 : vector<1x1x16x160xbf16> to vector<16x160xbf16>
    %c0_5 = arith.constant 0 : index
    %c0_6 = arith.constant 0 : index
    %c0_7 = arith.constant 0 : index
    %c23 = arith.constant 23 : index
    %4 = vector.load %arg2[%c0_5, %c0_6, %c0_7, %c23] : memref<1x1x16x260xbf16, #tpu.memory_space<vmem>>, vector<1x1x16x160xbf16>
    %5 = vector.shape_cast %4 : vector<1x1x16x160xbf16> to vector<16x160xbf16>
    %c0_8 = arith.constant 0 : index
    %c0_9 = arith.constant 0 : index
    %c0_10 = arith.constant 0 : index
    %c41 = arith.constant 41 : index
    %6 = vector.load %arg2[%c0_8, %c0_9, %c0_10, %c41] : memref<1x1x16x260xbf16, #tpu.memory_space<vmem>>, vector<1x1x16x160xbf16>
    %7 = vector.shape_cast %6 : vector<1x1x16x160xbf16> to vector<16x160xbf16>
    %c0_11 = arith.constant 0 : index
    %c0_12 = arith.constant 0 : index
    %c0_13 = arith.constant 0 : index
    %c42 = arith.constant 42 : index
    %8 = vector.load %arg2[%c0_11, %c0_12, %c0_13, %c42] : memref<1x1x16x260xbf16, #tpu.memory_space<vmem>>, vector<1x1x16x160xbf16>
    %9 = vector.shape_cast %8 : vector<1x1x16x160xbf16> to vector<16x160xbf16>
    %c0_14 = arith.constant 0 : index
    %c0_15 = arith.constant 0 : index
    %c0_16 = arith.constant 0 : index
    %c43 = arith.constant 43 : index
    %10 = vector.load %arg2[%c0_14, %c0_15, %c0_16, %c43] : memref<1x1x16x260xbf16, #tpu.memory_space<vmem>>, vector<1x1x16x160xbf16>
    %11 = vector.shape_cast %10 : vector<1x1x16x160xbf16> to vector<16x160xbf16>
    %c0_17 = arith.constant 0 : index
    %c0_18 = arith.constant 0 : index
    %c0_19 = arith.constant 0 : index
    %c61 = arith.constant 61 : index
    %12 = vector.load %arg2[%c0_17, %c0_18, %c0_19, %c61] : memref<1x1x16x260xbf16, #tpu.memory_space<vmem>>, vector<1x1x16x160xbf16>
    %13 = vector.shape_cast %12 : vector<1x1x16x160xbf16> to vector<16x160xbf16>
    %c0_20 = arith.constant 0 : index
    %c0_21 = arith.constant 0 : index
    %c0_22 = arith.constant 0 : index
    %c62 = arith.constant 62 : index
    %14 = vector.load %arg2[%c0_20, %c0_21, %c0_22, %c62] : memref<1x1x16x260xbf16, #tpu.memory_space<vmem>>, vector<1x1x16x160xbf16>
    %15 = vector.shape_cast %14 : vector<1x1x16x160xbf16> to vector<16x160xbf16>
    %c0_23 = arith.constant 0 : index
    %c0_24 = arith.constant 0 : index
    %c0_25 = arith.constant 0 : index
    %c63 = arith.constant 63 : index
    %16 = vector.load %arg2[%c0_23, %c0_24, %c0_25, %c63] : memref<1x1x16x260xbf16, #tpu.memory_space<vmem>>, vector<1x1x16x160xbf16>
    %17 = vector.shape_cast %16 : vector<1x1x16x160xbf16> to vector<16x160xbf16>
    %c0_26 = arith.constant 0 : index
    %c0_27 = arith.constant 0 : index
    %c0_28 = arith.constant 0 : index
    %c0_29 = arith.constant 0 : index
    %18 = vector.load %arg2[%c0_26, %c0_27, %c0_28, %c0_29] : memref<1x1x16x260xbf16, #tpu.memory_space<vmem>>, vector<1x1x16x160xbf16>
    %19 = vector.shape_cast %18 : vector<1x1x16x160xbf16> to vector<16x160xbf16>
    %c0_30 = arith.constant 0 : index
    %c0_31 = arith.constant 0 : index
    %c0_32 = arith.constant 0 : index
    %c2 = arith.constant 2 : index
    %20 = vector.load %arg2[%c0_30, %c0_31, %c0_32, %c2] : memref<1x1x16x260xbf16, #tpu.memory_space<vmem>>, vector<1x1x16x160xbf16>
    %21 = vector.shape_cast %20 : vector<1x1x16x160xbf16> to vector<16x160xbf16>
    %c0_33 = arith.constant 0 : index
    %c0_34 = arith.constant 0 : index
    %c0_35 = arith.constant 0 : index
    %c4 = arith.constant 4 : index
    %22 = vector.load %arg2[%c0_33, %c0_34, %c0_35, %c4] : memref<1x1x16x260xbf16, #tpu.memory_space<vmem>>, vector<1x1x16x160xbf16>
    %23 = vector.shape_cast %22 : vector<1x1x16x160xbf16> to vector<16x160xbf16>
    %c0_36 = arith.constant 0 : index
    %c0_37 = arith.constant 0 : index
    %c0_38 = arith.constant 0 : index
    %c40 = arith.constant 40 : index
    %24 = vector.load %arg2[%c0_36, %c0_37, %c0_38, %c40] : memref<1x1x16x260xbf16, #tpu.memory_space<vmem>>, vector<1x1x16x160xbf16>
    %25 = vector.shape_cast %24 : vector<1x1x16x160xbf16> to vector<16x160xbf16>
    %c0_39 = arith.constant 0 : index
    %c0_40 = arith.constant 0 : index
    %c0_41 = arith.constant 0 : index
    %c44 = arith.constant 44 : index
    %26 = vector.load %arg2[%c0_39, %c0_40, %c0_41, %c44] : memref<1x1x16x260xbf16, #tpu.memory_space<vmem>>, vector<1x1x16x160xbf16>
    %27 = vector.shape_cast %26 : vector<1x1x16x160xbf16> to vector<16x160xbf16>
    %c0_42 = arith.constant 0 : index
    %c0_43 = arith.constant 0 : index
    %c0_44 = arith.constant 0 : index
    %c80 = arith.constant 80 : index
    %28 = vector.load %arg2[%c0_42, %c0_43, %c0_44, %c80] : memref<1x1x16x260xbf16, #tpu.memory_space<vmem>>, vector<1x1x16x160xbf16>
    %29 = vector.shape_cast %28 : vector<1x1x16x160xbf16> to vector<16x160xbf16>
    %c0_45 = arith.constant 0 : index
    %c0_46 = arith.constant 0 : index
    %c0_47 = arith.constant 0 : index
    %c82 = arith.constant 82 : index
    %30 = vector.load %arg2[%c0_45, %c0_46, %c0_47, %c82] : memref<1x1x16x260xbf16, #tpu.memory_space<vmem>>, vector<1x1x16x160xbf16>
    %31 = vector.shape_cast %30 : vector<1x1x16x160xbf16> to vector<16x160xbf16>
    %c0_48 = arith.constant 0 : index
    %c0_49 = arith.constant 0 : index
    %c0_50 = arith.constant 0 : index
    %c84 = arith.constant 84 : index
    %32 = vector.load %arg2[%c0_48, %c0_49, %c0_50, %c84] : memref<1x1x16x260xbf16, #tpu.memory_space<vmem>>, vector<1x1x16x160xbf16>
    %33 = vector.shape_cast %32 : vector<1x1x16x160xbf16> to vector<16x160xbf16>
    %34 = tpu.concatenate %1, %3, %5, %7, %9, %11, %13, %15, %17, %19, %21, %23, %25, %27, %29, %31 in 0 : vector<16x160xbf16>, vector<16x160xbf16>, vector<16x160xbf16>, vector<16x160xbf16>, vector<16x160xbf16>, vector<16x160xbf16>, vector<16x160xbf16>, vector<16x160xbf16>, vector<16x160xbf16>, vector<16x160xbf16>, vector<16x160xbf16>, vector<16x160xbf16>, vector<16x160xbf16>, vector<16x160xbf16>, vector<16x160xbf16>, vector<16x160xbf16> -> vector<256x160xbf16>
    %35 = tpu.concatenate %34, %33 in 0 : vector<256x160xbf16>, vector<16x160xbf16> -> vector<272x160xbf16>
    %c0_51 = arith.constant 0 : index
    %c0_52 = arith.constant 0 : index
    %36 = vector.load %arg3[%c0_51, %c0_52] : memref<8x272xbf16, #tpu.memory_space<vmem>>, vector<8x272xbf16>
    %cst = arith.constant dense<0.000000e+00> : vector<8x160xf32>
    %37 = tpu.matmul %36, %35, %cst {dimension_numbers = #tpu.dot_dimension_numbers<[1], [0], [0], [1], [0, 0, 1, 1], [], []>} : vector<8x272xbf16>, vector<272x160xbf16>, vector<8x160xf32> -> vector<8x160xf32>
    %c0_53 = arith.constant 0 : index
    %c0_54 = arith.constant 0 : index
    %c0_55 = arith.constant 0 : index
    %38 = vector.load %arg4[%c0_53, %c0_54, %c0_55] : memref<1x1x160xf32, #tpu.memory_space<vmem>>, vector<1x1x160xf32>
    %39 = vector.shape_cast %38 : vector<1x1x160xf32> to vector<1x160xf32>
    %40 = vector.broadcast %39 : vector<1x160xf32> to vector<8x160xf32>
    %41 = arith.mulf %37, %40 : vector<8x160xf32>
    %42 = arith.truncf %41 : vector<8x160xf32> to vector<8x160xbf16>
    %c0_56 = arith.constant 0 : index
    %c0_57 = arith.constant 0 : index
    %c0_58 = arith.constant 0 : index
    %c0_59 = arith.constant 0 : index
    %43 = vector.load %arg5[%c0_56, %c0_57, %c0_58, %c0_59] : memref<1x1x8x160xbf16, #tpu.memory_space<vmem>>, vector<1x1x8x160xbf16>
    %44 = vector.shape_cast %43 : vector<1x1x8x160xbf16> to vector<8x160xbf16>
    %45 = vector.shape_cast %42 : vector<8x160xbf16> to vector<1x1x8x160xbf16>
    tpu.vector_store %arg5[%c0_56, %c0_57, %c0_58, %c0_59], %45 {strides = array<i32>} : memref<1x1x8x160xbf16, #tpu.memory_space<vmem>>, vector<1x1x8x160xbf16>,
    %cst_60 = arith.constant dense<0.000000e+00> : vector<8xf32>
    %46 = vector.multi_reduction <add>, %41, %cst_60 [1] : vector<8x160xf32> to vector<8xf32>
    %47 = vector.shape_cast %46 : vector<8xf32> to vector<8x1xf32>
    %c0_61 = arith.constant 0 : index
    %c0_62 = arith.constant 0 : index
    %c0_63 = arith.constant 0 : index
    %c0_64 = arith.constant 0 : index
    %48 = vector.load %arg6[%c0_61, %c0_62, %c0_63, %c0_64] : memref<1x1x8x2xf32, #tpu.memory_space<vmem>>, vector<1x1x8x1xf32>
    %49 = vector.shape_cast %48 : vector<1x1x8x1xf32> to vector<8x1xf32>
    %50 = vector.shape_cast %47 : vector<8x1xf32> to vector<1x1x8x1xf32>
    tpu.vector_store %arg6[%c0_61, %c0_62, %c0_63, %c0_64], %50 {strides = array<i32>} : memref<1x1x8x2xf32, #tpu.memory_space<vmem>>, vector<1x1x8x1xf32>,
    %51 = arith.mulf %41, %41 : vector<8x160xf32>
    %cst_65 = arith.constant dense<0.000000e+00> : vector<8xf32>
    %52 = vector.multi_reduction <add>, %51, %cst_65 [1] : vector<8x160xf32> to vector<8xf32>
    %53 = vector.shape_cast %52 : vector<8xf32> to vector<8x1xf32>
    %c0_66 = arith.constant 0 : index
    %c0_67 = arith.constant 0 : index
    %c0_68 = arith.constant 0 : index
    %c1 = arith.constant 1 : index
    %54 = vector.load %arg6[%c0_66, %c0_67, %c0_68, %c1] : memref<1x1x8x2xf32, #tpu.memory_space<vmem>>, vector<1x1x8x1xf32>
    %55 = vector.shape_cast %54 : vector<1x1x8x1xf32> to vector<8x1xf32>
    %56 = vector.shape_cast %53 : vector<8x1xf32> to vector<1x1x8x1xf32>
    tpu.vector_store %arg6[%c0_66, %c0_67, %c0_68, %c1], %56 {strides = array<i32>} : memref<1x1x8x2xf32, #tpu.memory_space<vmem>>, vector<1x1x8x1xf32>,
    return
  }
  func.func @transform_0(%arg0: i32, %arg1: i32) -> (i32, i32, i32, i32) {
    %c0_i32 = arith.constant 0 : i32
    %c0_i32_0 = arith.constant 0 : i32
    %c0_i32_1 = arith.constant 0 : i32
    return %arg0, %arg1, %c0_i32, %c0_i32_0 : i32, i32, i32, i32
  }
  func.func @transform_1(%arg0: i32, %arg1: i32) -> (i32, i32) {
    %c0_i32 = arith.constant 0 : i32
    %c0_i32_0 = arith.constant 0 : i32
    %c0_i32_1 = arith.constant 0 : i32
    return %c0_i32, %c0_i32_0 : i32, i32
  }
  func.func @transform_2(%arg0: i32, %arg1: i32) -> (i32, i32, i32) {
    %c0_i32 = arith.constant 0 : i32
    %c0_i32_0 = arith.constant 0 : i32
    %c0_i32_1 = arith.constant 0 : i32
    return %arg1, %c0_i32, %c0_i32_0 : i32, i32, i32
  }
  func.func @transform_3(%arg0: i32, %arg1: i32) -> (i32, i32, i32, i32) {
    %c0_i32 = arith.constant 0 : i32
    %c0_i32_0 = arith.constant 0 : i32
    %c0_i32_1 = arith.constant 0 : i32
    return %arg0, %arg1, %c0_i32, %c0_i32_0 : i32, i32, i32, i32
  }
  func.func @transform_4(%arg0: i32, %arg1: i32) -> (i32, i32, i32, i32) {
    %c0_i32 = arith.constant 0 : i32
    %c0_i32_0 = arith.constant 0 : i32
    %c0_i32_1 = arith.constant 0 : i32
    return %arg0, %arg1, %c0_i32, %c0_i32_0 : i32, i32, i32, i32
  }
}

</mosaic_0001>

<bundles_post_ra>
// kernel: _lambda_.1
= control target key start
LH: loop header
LB: loop body
LE: loop exit
PB: predicated region body
PF: predicated region fallthrough
CT: control target
= control target key end

     0   :  { %s955_s15 = smov 0   ;;  %s957_s16 = smov 0   ;;  %s1094_s0 = inlined_call_operand.vmem [shape: bf16[2,2,16,260], index: 0, kind: input, shape index: {}]   ;;  %s1095_s1 = inlined_call_operand.vmem [shape: bf16[8,272], index: 1, kind: input, shape index: {}]   ;;  %s1096_s2 = inlined_call_operand.vmem [shape: f32[2,1,160], index: 2, kind: input, shape index: {}]   ;;  %s1097_s3 = inlined_call_operand.vmem [shape: bf16[2,2,8,160], index: 3, kind: output, shape index: {0}]   ;;  %s1098_s4 = inlined_call_operand.vmem [shape: f32[2,2,8,2], index: 4, kind: output, shape index: {1}]  }
   0x1   :  { %s959_s17 = smov 0   ;;  %s961_s18 = smov 0  }
   0x2   :  { %s963_s19 = smov 0  }
   0x3 LB: > { %s24_s20 = sadd.s32 1, %s903_s17  ;;  %s27_s21 = sadd.s32 1, %s907_s18  ;;  %s911_s19 = sphi %s963_s19, %s15_s19   ;;  %s907_s18 = sphi %s961_s18, %s1102_s18   ;;  %s903_s17 = sphi %s959_s17, %s1101_s17   ;;  %s899_s16 = sphi %s957_s16, %s1100_s16   ;;  %s895_s15 = sphi %s955_s15, %s1099_s15  }
   0x4   : > { %p25_p0 = scmp.ge.s32.totalorder %s24_s20, 2  ;;  %p790_p1 = scmp.ge.s32.totalorder %s911_s19, 1 }
   0x5   : > { %p196_p2 = scmp.lt.s32.totalorder %s911_s19, 5 }
   0x6   : > { %s1104_s20 = smov (%p25_p0, %s24_s20), 0  ;;  %s1106_s21 = smov (!%p25_p0, %s27_s21), %s907_s18 }
   0x7   : > { %p197_p3 = pnand %p790_p1, %p196_p2  ;;  %p29_p4 = scmp.ge.s32.totalorder %s1106_s21, 2 }
   0x8   : > { %p242_p5 = scmp.lt.s32.totalorder (!%p197_p3), %s899_s16, 1  ;;  %p244_p6 = scmp.lt.s32.totalorder (!%p197_p3), %s895_s15, 1 }
   0x9   : > { %s1108_s21 = smov (%p29_p4, %s1106_s21), 0  ;;  %200 = sbr.rel (%p197_p3) target bundleno = 675 (0x2a3), region = 32 }
   0xa   : > { %s913_s29 = smov (!%p197_p3), 88   ;;  %s914_s30 = smov (!%p197_p3), 87  }
   0xb   : > { %s915_s5 = smov (!%p197_p3), 106   ;;  %s916_s6 = smov (!%p197_p3), 107  }
   0xc   : > { %s917_s7 = smov (!%p197_p3), 108   ;;  %s918_s8 = smov (!%p197_p3), 126  }
   0xd   : > { %s919_s9 = smov (!%p197_p3), 127   ;;  %s920_s10 = smov (!%p197_p3), 67  }
   0xe   : > { %s1110_s16 = smov (!%p242_p5, %s899_s16), 1  ;;  %s1112_s15 = smov (!%p244_p6, %s895_s15), 1  ;;  %vm323_vm0 = vcmask 711680   ;;  %vm317_vm1 = vcmask 719872   ;;  %vm311_vm2 = vcmask 867328   ;;  %vm305_vm3 = vcmask 875520  }
   0xf   : > { %s809_s22 = smul.u32 12, %s1110_s16  ;;  %s921_s11 = smov 69   ;;  %vm299_vm4 = vcmask 883712   ;;  %vm293_vm5 = vcmask 1031168   ;;  %vm287_vm6 = vcmask 1039360   ;;  %vm371_vm7 = vcmask 547840  }
  0x10   : > { %s808_s23 = smul.u32 6, %s1112_s15  ;;  %s922_s12 = smov 105   ;;  %vm365_vm8 = vcmask 564224   ;;  %vm359_vm9 = vcmask 859136   ;;  %vm347_vm10 = vcmask 138240   ;;  %vm353_vm11 = vcmask 891904  }
  0x11   : > { %s923_s13 = smov 109   ;;  %s924_s14 = smov 17   ;;  %vm341_vm12 = vcmask 154624   ;;  %v1032_v44 = vld [vmem:[%s1095_s1] sm:$0xff]  ;;  %vm335_vm13 = vcmask 171008   ;;  %v929_v46 = vmov 0  }
  0x12   : > { %s248_s24 = sadd.s32 %s809_s22, %s808_s23  ;;  %s925_s22 = smov 19   ;;  %v801_v45 = vcombine.high %v1032_v44, %v1032_v44  ;;  %582 = vmatprep.mubr.bf16.mxu1 %v929_v46  ;;  %vm329_vm14 = vcmask 703488   ;;  %vm377_vm15 = vcmask 531456  }
  0x13   : > { %s791_s25 = sshll.u32 %s248_s24, 2  ;;  %s926_s23 = smov 21  }
  0x14   : > { %s250_s28 = scalar_lea.vmem %s1094_s0, %s791_s25  ;;  %s927_s24 = smov 86   ;;  %541 = vmatprep.mubr.bf16.mxu0 %v801_v45 }
  0x15   : > { %v867_v0 = vld [vmem:[%s250_s28] ss:$12 sps:$4 sm:$0xff]   ;;  %v869_v1 = vld [vmem:[%s250_s28 + $0x4] ss:$12 sps:$4 sm:$0xff]   ;;  %s928_s25 = smov 65  }
  0x16   : > { %313 = vrot.lane.b32.xlu1 %v867_v0, %s913_s29  ;;  %319 = vrot.lane.b32.xlu0 %v867_v0, %s914_s30 }
  0x1a   : > { %315 = vrot.lane.b32.xlu1 %v869_v1, %s913_s29  ;;  %321 = vrot.lane.b32.xlu0 %v869_v1, %s914_s30  ;;  %s792_s30 = sshll.u32 %s1112_s15, 1 }
  0x1e   : > { %309 = vrot.lane.b32.xlu1 %v869_v1, %s915_s5  ;;  %307 = vrot.lane.b32.xlu0 %v867_v0, %s915_s5 }
  0x22   : > { %303 = vrot.lane.b32.xlu1 %v869_v1, %s916_s6  ;;  %301 = vrot.lane.b32.xlu0 %v867_v0, %s916_s6 }
  0x26   : > { %297 = vrot.lane.b32.xlu1 %v869_v1, %s917_s7  ;;  %295 = vrot.lane.b32.xlu0 %v867_v0, %s917_s7  ;;  %s254_s7 = scalar_lea.vmem %s1096_s2, %s792_s30 }
  0x2a   : > { %291 = vrot.lane.b32.xlu1 %v869_v1, %s918_s8  ;;  %289 = vrot.lane.b32.xlu0 %v867_v0, %s918_s8  ;;  %s794_s8 = sshll.u32 %s1110_s16, 2 }
  0x2e   : > { %285 = vrot.lane.b32.xlu1 %v869_v1, %s919_s9  ;;  %283 = vrot.lane.b32.xlu0 %v867_v0, %s919_s9  ;;  %s261_s9 = sadd.s32 %s794_s8, %s792_s30 }
  0x32   : > { %369 = vrot.lane.b32.xlu1 %v869_v1, %s920_s10  ;;  %367 = vrot.lane.b32.xlu0 %v867_v0, %s920_s10  ;;  %s795_s10 = sshll.u32 %s261_s9, 2 }
  0x36   : > { %363 = vrot.lane.b32.xlu1 %v869_v1, %s921_s11  ;;  %361 = vrot.lane.b32.xlu0 %v867_v0, %s921_s11 }
  0x3a   : > { %357 = vrot.lane.b32.xlu1 %v869_v1, %s922_s12  ;;  %355 = vrot.lane.b32.xlu0 %v867_v0, %s922_s12 }
  0x3e   : > { %351 = vrot.lane.b32.xlu1 %v869_v1, %s923_s13  ;;  %349 = vrot.lane.b32.xlu0 %v867_v0, %s923_s13  ;;  %s263_s13 = scalar_lea.vmem %s1097_s3, %s795_s10 }
  0x42   : > { %345 = vrot.lane.b32.xlu1 %v869_v1, %s924_s14  ;;  %343 = vrot.lane.b32.xlu0 %v867_v0, %s924_s14  ;;  %s796_s14 = sshll.u32 %s1110_s16, 1 }
  0x46   : > { %339 = vrot.lane.b32.xlu1 %v869_v1, %s925_s22  ;;  %337 = vrot.lane.b32.xlu0 %v867_v0, %s925_s22  ;;  %s269_s22 = sadd.s32 %s796_s14, %s1112_s15 }
  0x4a   : > { %333 = vrot.lane.b32.xlu1 %v869_v1, %s926_s23  ;;  %331 = vrot.lane.b32.xlu0 %v867_v0, %s926_s23  ;;  %s797_s23 = sshll.u32 %s269_s22, 3 }
  0x4b   : > { %s271_s26 = scalar_lea.vmem %s1098_s4, %s797_s23 }
  0x4e   : > { %327 = vrot.lane.b32.xlu1 %v869_v1, %s927_s24  ;;  %325 = vrot.lane.b32.xlu0 %v867_v0, %s927_s24 }
  0x52   : > { %375 = vrot.lane.b32.xlu1 %v869_v1, %s928_s25  ;;  %373 = vrot.lane.b32.xlu0 %v867_v0, %s928_s25 }
  0x88   : > { %v314_v2 = vpop.permute.xlu1 %313  ;;  %v320_v3 = vpop.permute.xlu0 %319 }
  0x8c   : > { %v316_v4 = vpop.permute.xlu1 %315  ;;  %v322_v5 = vpop.permute.xlu0 %321 }
  0x8d   : > { %417 = vrot.lane.b32.xlu1 %v322_v5, %s916_s6  ;;  %v324_v6 = vsel %vm323_vm0, %v320_v3, %v322_v5  ;;  %v318_v9 = vsel %vm317_vm1, %v314_v2, %v316_v4  ;;  %vm505_vm0 = vcmask 130048   ;;  %vm613_vm1 = vcmask 1043456  }
  0x8e   : > { %415 = vrot.lane.b32.xlu0 %v324_v6, %s916_s6 }
  0x90   : > { %v310_v7 = vpop.permute.xlu1 %309  ;;  %v308_v8 = vpop.permute.xlu0 %307 }
  0x91   : > { %413 = vrot.lane.b32.xlu1 %v316_v4, %s916_s6  ;;  %v312_v12 = vsel %vm311_vm2, %v308_v8, %v310_v7  ;;  %vm614_vm2 = vcmask 261124  }
  0x92   : > { %411 = vrot.lane.b32.xlu0 %v318_v9, %s916_s6 }
  0x94   : > { %v1000_v10 = vpop.permute.xlu1 %303  ;;  %v302_v11 = vpop.permute.xlu0 %301 }
  0x95   : > { %409 = vrot.lane.b32.xlu1 %v310_v7, %s916_s6  ;;  %v1008_v15 = vsel %vm305_vm3, %v302_v11, %v1000_v10 }
  0x96   : > { %407 = vrot.lane.b32.xlu0 %v312_v12, %s916_s6 }
  0x98   : > { %v298_v13 = vpop.permute.xlu1 %297  ;;  %v296_v14 = vpop.permute.xlu0 %295 }
  0x99   : > { %405 = vrot.lane.b32.xlu1 %v1000_v10, %s916_s6  ;;  %v300_v18 = vsel %vm299_vm4, %v296_v14, %v298_v13  ;;  %vm615_vm4 = vmor %vm614_vm2, %vm613_vm1 }
  0x9a   : > { %403 = vrot.lane.b32.xlu0 %v1008_v15, %s916_s6 }
  0x9c   : > { %v292_v16 = vpop.permute.xlu1 %291  ;;  %v290_v17 = vpop.permute.xlu0 %289 }
  0x9d   : > { %401 = vrot.lane.b32.xlu1 %v298_v13, %s916_s6  ;;  %v294_v21 = vsel %vm293_vm5, %v290_v17, %v292_v16  ;;  %vm622_vm5 = vcmask 7168  }
  0x9e   : > { %399 = vrot.lane.b32.xlu0 %v300_v18, %s916_s6 }
  0xa0   : > { %v286_v19 = vpop.permute.xlu1 %285  ;;  %v284_v20 = vpop.permute.xlu0 %283 }
  0xa1   : > { %397 = vrot.lane.b32.xlu1 %v292_v16, %s916_s6  ;;  %v288_v24 = vsel %vm287_vm6, %v284_v20, %v286_v19  ;;  %vm630_vm6 = vcmask 15368  }
  0xa2   : > { %395 = vrot.lane.b32.xlu0 %v294_v21, %s916_s6 }
  0xa4   : > { %v370_v22 = vpop.permute.xlu1 %369  ;;  %v368_v23 = vpop.permute.xlu0 %367 }
  0xa5   : > { %393 = vrot.lane.b32.xlu1 %v286_v19, %s916_s6  ;;  %v372_v34 = vsel %vm371_vm7, %v368_v23, %v370_v22 }
  0xa6   : > { %391 = vrot.lane.b32.xlu0 %v288_v24, %s916_s6 }
  0xa8   : > { %v364_v25 = vpop.permute.xlu1 %363  ;;  %v362_v26 = vpop.permute.xlu0 %361 }
  0xa9   : > { %449 = vrot.lane.b32.xlu1 %v370_v22, %s916_s6  ;;  %v366_v36 = vsel %vm365_vm8, %v362_v26, %v364_v25 }
  0xac   : > { %v358_v27 = vpop.permute.xlu1 %357  ;;  %v356_v28 = vpop.permute.xlu0 %355 }
  0xad   : > { %445 = vrot.lane.b32.xlu1 %v364_v25, %s916_s6  ;;  %v360_v39 = vsel %vm359_vm9, %v356_v28, %v358_v27 }
  0xb0   : > { %v352_v29 = vpop.permute.xlu1 %351  ;;  %v350_v30 = vpop.permute.xlu0 %349 }
  0xb1   : > { %441 = vrot.lane.b32.xlu1 %v358_v27, %s916_s6  ;;  %v354_v41 = vsel %vm353_vm11, %v350_v30, %v352_v29 }
  0xb4   : > { %v346_v31 = vpop.permute.xlu1 %345  ;;  %v344_v32 = vpop.permute.xlu0 %343 }
  0xb5   : > { %437 = vrot.lane.b32.xlu1 %v352_v29, %s916_s6  ;;  %431 = vrot.lane.b32.xlu0 %v344_v32, %s916_s6  ;;  %v348_v40 = vsel %vm347_vm10, %v344_v32, %v346_v31 }
  0xb8   : > { %v340_v33 = vpop.permute.xlu1 %339  ;;  %v338_v37 = vpop.permute.xlu0 %337 }
  0xb9   : > { %447 = vrot.lane.b32.xlu0 %v372_v34, %s916_s6  ;;  %v342_v43 = vsel %vm341_vm12, %v338_v37, %v340_v33 }
  0xbc   : > { %v334_v35 = vpop.permute.xlu1 %333  ;;  %v332_v42 = vpop.permute.xlu0 %331 }
  0xbd   : > { %443 = vrot.lane.b32.xlu0 %v366_v36, %s916_s6  ;;  %v336_v48 = vsel %vm335_vm13, %v332_v42, %v334_v35 }
  0xc0   : > { %v328_v38 = vpop.permute.xlu1 %327  ;;  %v326_v47 = vpop.permute.xlu0 %325 }
  0xc1   : > { %421 = vrot.lane.b32.xlu1 %v328_v38, %s916_s6  ;;  %439 = vrot.lane.b32.xlu0 %v360_v39, %s916_s6  ;;  %v330_v51 = vsel %vm329_vm14, %v326_v47, %v328_v38  ;;  %v872_v38 = vld [vmem:[%s1095_s1 + $0x8] ss:$0 sps:$4 sm:$0xff]   ;;  %v593_v39 = vlaneseq }
  0xc4   : > { %v376_v49 = vpop.permute.xlu1 %375  ;;  %v374_v50 = vpop.permute.xlu0 %373 }
  0xc5   : > { %433 = vrot.lane.b32.xlu1 %v348_v40, %s916_s6  ;;  %435 = vrot.lane.b32.xlu0 %v354_v41, %s916_s6  ;;  %v378_v52 = vsel %vm377_vm15, %v374_v50, %v376_v49  ;;  %v594_v40 = vshrl.u32 %v593_v39, 7 }
  0xc7   : > { %v595_v41 = vsub.s32 0, %v594_v40 }
  0xc9   : > { %429 = vrot.lane.b32.xlu1 %v342_v43, %s916_s6  ;;  %427 = vrot.lane.b32.xlu0 %v338_v37, %s916_s6  ;;  %v800_v37 = vcombine.low %v1032_v44, %v1032_v44  ;;  %v599_v43 = vsub.s32 1, %v594_v40 }
  0xcd   : > { %425 = vrot.lane.b32.xlu1 %v336_v48, %s916_s6  ;;  %423 = vrot.lane.b32.xlu0 %v332_v42, %s916_s6  ;;  %v591_v42 = vld [vmem:[%s254_s7] sm:$0x3] }
  0xce   : > { %v596_v46 = vrot.slane %v591_v42, %v595_v41  ;;  %v600_v48 = vrot.slane %v591_v42, %v599_v43 }
  0xd1   : > { %419 = vrot.lane.b32.xlu0 %v330_v51, %s916_s6  ;;  %453 = vrot.lane.b32.xlu1 %v376_v49, %s916_s6 }
  0xd5   : > { %451 = vrot.lane.b32.xlu0 %v378_v52, %s916_s6 }
  0xff   : > { %v418_v53 = vpop.permute.xlu1 %417 }
 0x100   : > { %509 = vmatprep.subr.bf16.mxu0 %v418_v53  ;;  %v416_v54 = vpop.permute.xlu0 %415 }
 0x101   : > { %v461_v55 = vsel %vm305_vm3, %v416_v54, %v418_v53 }
 0x102   : > { %510 = vmatpush1.bf16.msra.mxu0 %v461_v55 }
 0x103   : > { %v414_v56 = vpop.permute.xlu1 %413 }
 0x104   : > { %511 = vmatprep.subr.bf16.mxu0 %v414_v56  ;;  %v412_v57 = vpop.permute.xlu0 %411 }
 0x105   : > { %v460_v58 = vsel %vm305_vm3, %v412_v57, %v414_v56 }
 0x106   : > { %512 = vmatpush1.bf16.msra.mxu0 %v460_v58 }
 0x107   : > { %v410_v59 = vpop.permute.xlu1 %409 }
 0x108   : > { %513 = vmatprep.subr.bf16.mxu0 %v410_v59  ;;  %v408_v60 = vpop.permute.xlu0 %407 }
 0x109   : > { %v459_v61 = vsel %vm305_vm3, %v408_v60, %v410_v59 }
 0x10a   : > { %514 = vmatpush1.bf16.msra.mxu0 %v459_v61 }
 0x10b   : > { %v406_v62 = vpop.permute.xlu1 %405 }
 0x10c   : > { %515 = vmatprep.subr.bf16.mxu0 %v406_v62  ;;  %v404_v63 = vpop.permute.xlu0 %403 }
 0x10d   : > { %v458_v0 = vsel %vm305_vm3, %v404_v63, %v406_v62 }
 0x10e   : > { %516 = vmatpush1.bf16.msra.mxu0 %v458_v0 }
 0x10f   : > { %v402_v1 = vpop.permute.xlu1 %401 }
 0x110   : > { %517 = vmatprep.subr.bf16.mxu0 %v402_v1  ;;  %v400_v2 = vpop.permute.xlu0 %399 }
 0x111   : > { %v457_v3 = vsel %vm305_vm3, %v400_v2, %v402_v1 }
 0x112   : > { %518 = vmatpush1.bf16.msra.mxu0 %v457_v3 }
 0x113   : > { %v398_v4 = vpop.permute.xlu1 %397 }
 0x114   : > { %519 = vmatprep.subr.bf16.mxu0 %v398_v4  ;;  %v396_v5 = vpop.permute.xlu0 %395 }
 0x115   : > { %v456_v6 = vsel %vm305_vm3, %v396_v5, %v398_v4 }
 0x116   : > { %520 = vmatpush1.bf16.msra.mxu0 %v456_v6 }
 0x117   : > { %v394_v7 = vpop.permute.xlu1 %393 }
 0x118   : > { %521 = vmatprep.subr.bf16.mxu0 %v394_v7  ;;  %v392_v8 = vpop.permute.xlu0 %391 }
 0x119   : > { %v455_v9 = vsel %vm305_vm3, %v392_v8, %v394_v7 }
 0x11a   : > { %522 = vmatpush1.bf16.msra.mxu0 %v455_v9 }
 0x11b   : > { %523 = vmatprep.subr.bf16.mxu0 %v1000_v10  ;;  %v450_v11 = vpop.permute.xlu1 %449 }
 0x11e   : > { %524 = vmatpush1.bf16.msra.mxu0 %v1008_v15 }
 0x11f   : > { %525 = vmatprep.subr.bf16.mxu0 %v450_v11  ;;  %v446_v12 = vpop.permute.xlu1 %445 }
 0x123   : > { %v442_v14 = vpop.permute.xlu1 %441 }
 0x127   : > { %v432_v13 = vpop.permute.xlu0 %431  ;;  %v438_v18 = vpop.permute.xlu1 %437 }
 0x12b   : > { %v448_v16 = vpop.permute.xlu0 %447 }
 0x12c   : > { %v469_v17 = vsel %vm305_vm3, %v448_v16, %v450_v11 }
 0x12d   : > { %526 = vmatpush2.bf16.msra.mxu0 %v469_v17 }
 0x12e   : > { %527 = vmatprep.subr.bf16.mxu0 %v446_v12 }
 0x12f   : > { %v444_v19 = vpop.permute.xlu0 %443 }
 0x130   : > { %v468_v20 = vsel %vm305_vm3, %v444_v19, %v446_v12 }
 0x131   : > { %528 = vmatpush2.bf16.msra.mxu0 %v468_v20 }
 0x132   : > { %529 = vmatprep.subr.bf16.mxu0 %v442_v14 }
 0x133   : > { %v422_v21 = vpop.permute.xlu1 %421  ;;  %v440_v10 = vpop.permute.xlu0 %439 }
 0x134   : > { %v467_v22 = vsel %vm305_vm3, %v440_v10, %v442_v14 }
 0x135   : > { %530 = vmatpush2.bf16.msra.mxu0 %v467_v22 }
 0x136   : > { %531 = vmatprep.subr.bf16.mxu0 %v438_v18 }
 0x137   : > { %v434_v15 = vpop.permute.xlu1 %433  ;;  %v436_v23 = vpop.permute.xlu0 %435 }
 0x138   : > { %v466_v24 = vsel %vm305_vm3, %v436_v23, %v438_v18  ;;  %v465_v27 = vsel %vm305_vm3, %v432_v13, %v434_v15 }
 0x139   : > { %532 = vmatpush2.bf16.msra.mxu0 %v466_v24 }
 0x13a   : > { %533 = vmatprep.subr.bf16.mxu0 %v434_v15 }
 0x13b   : > { %v430_v25 = vpop.permute.xlu1 %429  ;;  %v428_v26 = vpop.permute.xlu0 %427 }
 0x13c   : > { %v464_v30 = vsel %vm305_vm3, %v428_v26, %v430_v25 }
 0x13d   : > { %534 = vmatpush2.bf16.msra.mxu0 %v465_v27 }
 0x13e   : > { %535 = vmatprep.subr.bf16.mxu0 %v430_v25 }
 0x13f   : > { %v426_v28 = vpop.permute.xlu1 %425  ;;  %v424_v29 = vpop.permute.xlu0 %423 }
 0x140   : > { %v463_v33 = vsel %vm305_vm3, %v424_v29, %v426_v28 }
 0x141   : > { %536 = vmatpush2.bf16.msra.mxu0 %v464_v30 }
 0x142   : > { %537 = vmatprep.subr.bf16.mxu0 %v426_v28 }
 0x143   : > { %v420_v31 = vpop.permute.xlu0 %419  ;;  %v454_v32 = vpop.permute.xlu1 %453 }
 0x144   : > { %564 = vmatprep.subr.bf16.mxu1 %v454_v32  ;;  %v462_v35 = vsel %vm305_vm3, %v420_v31, %v422_v21 }
 0x145   : > { %538 = vmatpush2.bf16.msra.mxu0 %v463_v33 }
 0x146   : > { %539 = vmatprep.subr.bf16.mxu0 %v422_v21 }
 0x147   : > { %v452_v34 = vpop.permute.xlu0 %451 }
 0x148   : > { %v470_v36 = vsel %vm305_vm3, %v452_v34, %v454_v32  ;;  %vm617_vm3 = vcmask 261120  }
 0x149   : > { %540 = vmatpush2.bf16.msra.mxu0 %v462_v35  ;;  %565 = vmatpush1.bf16.msra.mxu1 %v470_v36 }
 0x14c   : > { %542 = vmatmul.mubr.bf16.vlgmr.msra.gmra.mxu0 %v800_v37  ;;  %803 = vmatmul.mubr.msk.bf16.vlgmr.msra.gmra.mxu1 %vm505_vm0, %v872_v38 }
 0x20c   : > { %v543_v44 = vpop.f32.mrf.mxu0  ;;  %v584_v45 = vpop.f32.mrf.mxu1 }
 0x20d   : > { %v585_v47 = vadd.f32 %v584_v45, %v543_v44 }
 0x20e   : > { %v545_v49 = vpop.f32.mrf.mxu0  ;;  %v586_v50 = vpop.f32.mrf.mxu1 }
 0x20f   : > { %v587_v51 = vadd.f32 %v586_v50, %v545_v49  ;;  %v603_v52 = vmul.f32 %v596_v46, %v585_v47 }
 0x210   : > { %v547_v53 = vpop.f32.mrf.mxu0  ;;  %v588_v54 = vpop.f32.mrf.mxu1 }
 0x211   : > { %v604_v55 = vmul.f32 %v600_v48, %v587_v51  ;;  %v624_v62 = vmul.f32 %v603_v52, %v603_v52 }
 0x212   : > { %v548_v56 = vpop.f32.mrf.mxu0  ;;  %v589_v57 = vpop.f32.mrf.mxu1 }
 0x213   : > { %v807_v58 = vpack.c.bf16 %v604_v55, %v603_v52  ;;  %v618_v59 = vsel %vm617_vm3, %v604_v55, 0.0  ;;  %v625_v60 = vmul.f32 %v604_v55, %v604_v55 }
 0x214   : > { %v619_v61 = vadd.f32 %v618_v59, %v603_v52 }
 0x215   : > { %616 = vst.msk [vmem:[%s263_s13] sm:$0xff] %vm615_vm4, %v807_v58  ;;  %v626_v63 = vsel %vm617_vm3, %v625_v60, 0.0 }
 0x216   : > { %620 = vadd.xlane.f32.xlu0 %v619_v61  ;;  %v627_v0 = vadd.f32 %v626_v63, %v624_v62 }
 0x218   : > { %628 = vadd.xlane.f32.xlu1 %v627_v0 }
 0x29f   : > { %v621_v1 = vpop.xlane.xlu0 %620 }
 0x2a0   : > { %623 = vst.msk [vmem:[%s271_s26] sm:$0xff] %vm622_vm5, %v621_v1 }
 0x2a1   : > { %v629_v2 = vpop.xlane.xlu1 %628 }
 0x2a2   : > { %631 = vst.msk [vmem:[%s271_s26] sm:$0xff] %vm630_vm6, %v629_v2 }
 0x2a3 PF: > { %s15_s19 = sadd.s32 1, %s911_s19   ;;  %s1099_s15 = smov %s903_s17 }
 0x2a4   : > { %p12_p7 = scmp.ge.s32.totalorder %s15_s19, 6   ;;  %s1100_s16 = smov %s907_s18 }
 0x2a5   : > { %s1101_s17 = smov %s1104_s20  ;;  %s1102_s18 = smov %s1108_s21 }
 0x2a6   :  { %14 = sbr.rel (!%p12_p7) target bundleno = 3 (0x3), region = 77 }

</bundles_post_ra>
